<compile_context>
chip_gen: v5e
topology: v5e:2x2
jax: 0.10.0
libtpu: 0.0.40
codegen_flags: <defaults>
</compile_context>

<pallas_src>
import jax
import jax.numpy as jnp
from jax.experimental import pallas as pl
from jax.experimental.pallas import tpu as pltpu

SUBLANE = 8      # f32 sublane count
MAX_TB = 1024    # max batch-tile rows (multiple of SUBLANE)


def _round_up(x, m):
    return ((x + m - 1) // m) * m


def _sac_actor_kernel(x_ref, w1_ref, b1_ref, w2_ref, b2_ref, w3_ref, b3_ref,
                      o_ref):
    # in-kernel f32 -> bf16 cast of the streamed obs tile (free VPU work under
    # DMA/MXU slack; avoids a wrapper-side pad+cast pass over obs)
    x = x_ref[...].astype(jnp.bfloat16)
    # layer 1: Linear (bf16 operands, f32 MXU accumulation) + bias + ReLU (f32)
    h = jnp.dot(x, w1_ref[...], preferred_element_type=jnp.float32) + b1_ref[...]
    h = jnp.maximum(h, 0.0).astype(jnp.bfloat16)
    # layer 2: Linear + bias + ReLU
    h = jnp.dot(h, w2_ref[...], preferred_element_type=jnp.float32) + b2_ref[...]
    h = jnp.maximum(h, 0.0).astype(jnp.bfloat16)
    # mu head: Linear, written at the real act_dim width (no lane padding)
    o_ref[...] = (jnp.dot(h, w3_ref[...], preferred_element_type=jnp.float32)
                  + b3_ref[...]).astype(o_ref.dtype)


def prepare_actor_params(w1, b1, w2, b2, w3, b3):
    """One-time (policy-load time) weight prep: bf16 casts for MXU-native
    operands. Biases stay f32 (added after the f32 accumulation). Weights are
    already [in, out]; biases [1, out]. Hoisted out of the per-call path."""
    return (w1.astype(jnp.bfloat16), b1.astype(jnp.float32),
            w2.astype(jnp.bfloat16), b2.astype(jnp.float32),
            w3.astype(jnp.bfloat16), b3.astype(jnp.float32))


@jax.jit
def sac_actor_forward(obs, w1b, b1, w2b, b2, w3b, b3):
    """obs: [B, obs_dim] f32 (passed through untouched).
    Weights bf16 [in, out] (from prepare_actor_params); biases f32 [1, out].
    Returns mu(latent_pi(obs)): [B, act_dim] f32."""
    B, obs_dim = obs.shape
    act_dim = w3b.shape[1]

    # Batch tile: big enough to amortize per-step overhead, small enough to
    # keep >= 2 grid steps for large batches (v7x dual-TensorCore sharding).
    if B <= SUBLANE:
        TB = B                                   # block == full dim, no padding
    else:
        TB = max(SUBLANE, min(MAX_TB, _round_up(pl.cdiv(B, 2), SUBLANE)))
    grid = (pl.cdiv(B, TB),)                     # ragged tail handled by Pallas
                                                 # (masked tail store; tail rows
                                                 #  are discarded, not read back)

    def row_spec(shape):     # streamed over the batch grid axis
        return pl.BlockSpec(shape, lambda i: (i, 0))

    def const_spec(shape):   # weights/biases: same block every step -> VMEM-resident
        return pl.BlockSpec(shape, lambda i: (0, 0))

    return pl.pallas_call(
        _sac_actor_kernel,
        out_shape=jax.ShapeDtypeStruct((B, act_dim), jnp.float32),
        grid=grid,
        in_specs=[
            row_spec((TB, obs_dim)),
            const_spec(w1b.shape), const_spec(b1.shape),
            const_spec(w2b.shape), const_spec(b2.shape),
            const_spec(w3b.shape), const_spec(b3.shape),
        ],
        out_specs=row_spec((TB, act_dim)),
        compiler_params=pltpu.CompilerParams(
            dimension_semantics=("parallel",)),
    )(obs, w1b, b1, w2b, b2, w3b, b3)


def init_linear_params(key, fan_in, fan_out):
    """Deterministic init mimicking torch.nn.Linear defaults:
    weight, bias ~ U(-1/sqrt(fan_in), 1/sqrt(fan_in)).
    Weight returned already transposed to [fan_in, fan_out] for x @ W."""
    kw, kb = jax.random.split(key)
    bound = 1.0 / jnp.sqrt(jnp.float32(fan_in))
    w = jax.random.uniform(kw, (fan_in, fan_out), jnp.float32, -bound, bound)
    b = jax.random.uniform(kb, (1, fan_out), jnp.float32, -bound, bound)
    return w, b


def reference_forward_f32(obs, w1, b1, w2, b2, w3, b3):
    h = jnp.maximum(obs @ w1 + b1, 0.0)
    h = jnp.maximum(h @ w2 + b2, 0.0)
    return h @ w3 + b3


def reference_forward_bf16(obs, w1, b1, w2, b2, w3, b3):
    # Same bf16-operand / f32-accumulate recipe as the kernel.
    h = jnp.dot(obs.astype(jnp.bfloat16), w1.astype(jnp.bfloat16),
                preferred_element_type=jnp.float32) + b1
    h = jnp.maximum(h, 0.0).astype(jnp.bfloat16)
    h = jnp.dot(h, w2.astype(jnp.bfloat16),
                preferred_element_type=jnp.float32) + b2
    h = jnp.maximum(h, 0.0).astype(jnp.bfloat16)
    return jnp.dot(h, w3.astype(jnp.bfloat16),
                   preferred_element_type=jnp.float32) + b3


if __name__ == "__main__":
    # Small shapes consistent with an SAC actor MLP.
    obs_dim = 8
    hidden = 32
    act_dim = 4

    root = jax.random.PRNGKey(0)
    k_obs, k1, k2, k3 = jax.random.split(root, 4)

    w1, b1 = init_linear_params(k1, obs_dim, hidden)
    w2, b2 = init_linear_params(k2, hidden, hidden)
    w3, b3 = init_linear_params(k3, hidden, act_dim)

    # One-time weight prep (hoisted out of the per-call path).
    params = prepare_actor_params(w1, b1, w2, b2, w3, b3)
    params = jax.block_until_ready(params)

    # Case 1: tiny batch (single grid step, block == full dims, no padding).
    # Case 2: batch that forces a 2-step grid with a ragged tail tile.
    for batch in (2, 20):
        obs = jax.random.normal(k_obs, (batch, obs_dim), jnp.float32)

        out = sac_actor_forward(obs, *params)
        out = jax.block_until_ready(out)

        ref_bf16 = reference_forward_bf16(obs, w1, b1, w2, b2, w3, b3)
        ref_f32 = reference_forward_f32(obs, w1, b1, w2, b2, w3, b3)

        assert out.shape == (batch, act_dim)
        # Tight check vs the same bf16/f32-accumulate recipe.
        assert jnp.allclose(out, ref_bf16, atol=1e-3, rtol=1e-3), (
            batch, float(jnp.max(jnp.abs(out - ref_bf16))))
        # Loose sanity check vs the full-f32 module semantics.
        assert jnp.allclose(out, ref_f32, atol=3e-2, rtol=3e-2), (
            batch, float(jnp.max(jnp.abs(out - ref_f32))))

    print("KERNEL_OK")
</pallas_src>

<mosaic_0001>
module attributes {stable_mosaic.version = 11 : i64} {
  func.func @_sac_actor_kernel(%arg0: i32, %arg1: memref<2x8xf32, #tpu.memory_space<vmem>>, %arg2: memref<8x32xbf16, #tpu.memory_space<vmem>>, %arg3: memref<1x32xf32, #tpu.memory_space<vmem>>, %arg4: memref<32x32xbf16, #tpu.memory_space<vmem>>, %arg5: memref<1x32xf32, #tpu.memory_space<vmem>>, %arg6: memref<32x4xbf16, #tpu.memory_space<vmem>>, %arg7: memref<1x4xf32, #tpu.memory_space<vmem>>, %arg8: memref<2x4xf32, #tpu.memory_space<vmem>>) attributes {dimension_semantics = [#tpu.dimension_semantics<parallel>], iteration_bounds = array<i64: 1>, scalar_prefetch = 0 : i64, scratch_operands = 0 : i64, tpu.core_type = #tpu.core_type<tc>, window_params = [{transform_indices = @transform_0, window_bounds = array<i64: 2, 8>}, {pipeline_mode = #tpu.pipeline_mode<synchronous>, transform_indices = @transform_1, window_bounds = array<i64: 8, 32>}, {pipeline_mode = #tpu.pipeline_mode<synchronous>, transform_indices = @transform_2, window_bounds = array<i64: 1, 32>}, {pipeline_mode = #tpu.pipeline_mode<synchronous>, transform_indices = @transform_3, window_bounds = array<i64: 32, 32>}, {pipeline_mode = #tpu.pipeline_mode<synchronous>, transform_indices = @transform_4, window_bounds = array<i64: 1, 32>}, {pipeline_mode = #tpu.pipeline_mode<synchronous>, transform_indices = @transform_5, window_bounds = array<i64: 32, 4>}, {pipeline_mode = #tpu.pipeline_mode<synchronous>, transform_indices = @transform_6, window_bounds = array<i64: 1, 4>}, {transform_indices = @transform_7, window_bounds = array<i64: 2, 4>}]} {
    %c0 = arith.constant 0 : index
    %c0_0 = arith.constant 0 : index
    %0 = vector.load %arg1[%c0, %c0_0] : memref<2x8xf32, #tpu.memory_space<vmem>>, vector<2x8xf32>
    %1 = arith.truncf %0 : vector<2x8xf32> to vector<2x8xbf16>
    %c0_1 = arith.constant 0 : index
    %c0_2 = arith.constant 0 : index
    %2 = vector.load %arg2[%c0_1, %c0_2] : memref<8x32xbf16, #tpu.memory_space<vmem>>, vector<8x32xbf16>
    %cst = arith.constant dense<0.000000e+00> : vector<2x32xf32>
    %3 = tpu.matmul %1, %2, %cst {dimension_numbers = #tpu.dot_dimension_numbers<[1], [0], [0], [1], [0, 0, 1, 1], [], []>} : vector<2x8xbf16>, vector<8x32xbf16>, vector<2x32xf32> -> vector<2x32xf32>
    %c0_3 = arith.constant 0 : index
    %c0_4 = arith.constant 0 : index
    %4 = vector.load %arg3[%c0_3, %c0_4] : memref<1x32xf32, #tpu.memory_space<vmem>>, vector<1x32xf32>
    %5 = vector.broadcast %4 : vector<1x32xf32> to vector<2x32xf32>
    %6 = arith.addf %3, %5 : vector<2x32xf32>
    %cst_5 = arith.constant 0.000000e+00 : f32
    %7 = vector.broadcast %cst_5 : f32 to vector<2x32xf32>
    %8 = arith.maximumf %6, %7 : vector<2x32xf32>
    %9 = arith.truncf %8 : vector<2x32xf32> to vector<2x32xbf16>
    %c0_6 = arith.constant 0 : index
    %c0_7 = arith.constant 0 : index
    %10 = vector.load %arg4[%c0_6, %c0_7] : memref<32x32xbf16, #tpu.memory_space<vmem>>, vector<32x32xbf16>
    %cst_8 = arith.constant dense<0.000000e+00> : vector<2x32xf32>
    %11 = tpu.matmul %9, %10, %cst_8 {dimension_numbers = #tpu.dot_dimension_numbers<[1], [0], [0], [1], [0, 0, 1, 1], [], []>} : vector<2x32xbf16>, vector<32x32xbf16>, vector<2x32xf32> -> vector<2x32xf32>
    %c0_9 = arith.constant 0 : index
    %c0_10 = arith.constant 0 : index
    %12 = vector.load %arg5[%c0_9, %c0_10] : memref<1x32xf32, #tpu.memory_space<vmem>>, vector<1x32xf32>
    %13 = vector.broadcast %12 : vector<1x32xf32> to vector<2x32xf32>
    %14 = arith.addf %11, %13 : vector<2x32xf32>
    %cst_11 = arith.constant 0.000000e+00 : f32
    %15 = vector.broadcast %cst_11 : f32 to vector<2x32xf32>
    %16 = arith.maximumf %14, %15 : vector<2x32xf32>
    %17 = arith.truncf %16 : vector<2x32xf32> to vector<2x32xbf16>
    %c0_12 = arith.constant 0 : index
    %c0_13 = arith.constant 0 : index
    %18 = vector.load %arg6[%c0_12, %c0_13] : memref<32x4xbf16, #tpu.memory_space<vmem>>, vector<32x4xbf16>
    %cst_14 = arith.constant dense<0.000000e+00> : vector<2x4xf32>
    %19 = tpu.matmul %17, %18, %cst_14 {dimension_numbers = #tpu.dot_dimension_numbers<[1], [0], [0], [1], [0, 0, 1, 1], [], []>} : vector<2x32xbf16>, vector<32x4xbf16>, vector<2x4xf32> -> vector<2x4xf32>
    %c0_15 = arith.constant 0 : index
    %c0_16 = arith.constant 0 : index
    %20 = vector.load %arg7[%c0_15, %c0_16] : memref<1x4xf32, #tpu.memory_space<vmem>>, vector<1x4xf32>
    %21 = vector.broadcast %20 : vector<1x4xf32> to vector<2x4xf32>
    %22 = arith.addf %19, %21 : vector<2x4xf32>
    %c0_17 = arith.constant 0 : index
    %c0_18 = arith.constant 0 : index
    %23 = vector.load %arg8[%c0_17, %c0_18] : memref<2x4xf32, #tpu.memory_space<vmem>>, vector<2x4xf32>
    tpu.vector_store %arg8[%c0_17, %c0_18], %22 {strides = array<i32>} : memref<2x4xf32, #tpu.memory_space<vmem>>, vector<2x4xf32>,
    return
  }
  func.func @transform_0(%arg0: i32) -> (i32, i32) {
    %c0_i32 = arith.constant 0 : i32
    %c0_i32_0 = arith.constant 0 : i32
    return %arg0, %c0_i32 : i32, i32
  }
  func.func @transform_1(%arg0: i32) -> (i32, i32) {
    %c0_i32 = arith.constant 0 : i32
    %c0_i32_0 = arith.constant 0 : i32
    %c0_i32_1 = arith.constant 0 : i32
    return %c0_i32, %c0_i32_0 : i32, i32
  }
  func.func @transform_2(%arg0: i32) -> (i32, i32) {
    %c0_i32 = arith.constant 0 : i32
    %c0_i32_0 = arith.constant 0 : i32
    %c0_i32_1 = arith.constant 0 : i32
    return %c0_i32, %c0_i32_0 : i32, i32
  }
  func.func @transform_3(%arg0: i32) -> (i32, i32) {
    %c0_i32 = arith.constant 0 : i32
    %c0_i32_0 = arith.constant 0 : i32
    %c0_i32_1 = arith.constant 0 : i32
    return %c0_i32, %c0_i32_0 : i32, i32
  }
  func.func @transform_4(%arg0: i32) -> (i32, i32) {
    %c0_i32 = arith.constant 0 : i32
    %c0_i32_0 = arith.constant 0 : i32
    %c0_i32_1 = arith.constant 0 : i32
    return %c0_i32, %c0_i32_0 : i32, i32
  }
  func.func @transform_5(%arg0: i32) -> (i32, i32) {
    %c0_i32 = arith.constant 0 : i32
    %c0_i32_0 = arith.constant 0 : i32
    %c0_i32_1 = arith.constant 0 : i32
    return %c0_i32, %c0_i32_0 : i32, i32
  }
  func.func @transform_6(%arg0: i32) -> (i32, i32) {
    %c0_i32 = arith.constant 0 : i32
    %c0_i32_0 = arith.constant 0 : i32
    %c0_i32_1 = arith.constant 0 : i32
    return %c0_i32, %c0_i32_0 : i32, i32
  }
  func.func @transform_7(%arg0: i32) -> (i32, i32) {
    %c0_i32 = arith.constant 0 : i32
    %c0_i32_0 = arith.constant 0 : i32
    return %arg0, %c0_i32 : i32, i32
  }
}

</mosaic_0001>

<bundles_post_ra>
// kernel: sac_actor_forward.1
= control target key start
LH: loop header
LB: loop body
LE: loop exit
PB: predicated region body
PF: predicated region fallthrough
CT: control target
= control target key end

     0   :  { %12 = vsyncpa [#allocation3], 0  ;;  %s361_s0 = inlined_call_operand.vmem [shape: f32[2,8], index: 0, kind: input, shape index: {}]   ;;  %s362_s1 = inlined_call_operand.hbm [shape: bf16[8,32], index: 1, kind: input, shape index: {}]   ;;  %s363_s2 = inlined_call_operand.vmem [shape: f32[1,32], index: 2, kind: input, shape index: {}]   ;;  %s364_s3 = inlined_call_operand.vmem [shape: bf16[32,32], index: 3, kind: input, shape index: {}]   ;;  %s365_s4 = inlined_call_operand.hbm [shape: f32[1,32], index: 4, kind: input, shape index: {}]   ;;  %s366_s5 = inlined_call_operand.vmem [shape: bf16[32,4], index: 5, kind: input, shape index: {}]   ;;  %s367_s6 = inlined_call_operand.vmem [shape: f32[1,4], index: 6, kind: input, shape index: {}]   ;;  %s368_s7 = inlined_call_operand.hbm [shape: f32[2,4], index: 7, kind: output, shape index: {}]  }
   0x1   :  { %13 = vsyncpa [#allocation6], 0 }
   0x2   :  { %14 = vsyncpa [#allocation4], 0  ;;  %s22_s26 = sshll.u32 %s362_s1, 4  ;;  %s288_s27 = smov [#allocation2]   ;;  %s23_s26 = int_to_ptr.hbm [resolvable:$true] %s22_s26 }
   0x3   :  { %s24_s28 = sshll.u32 %s288_s27, 4  ;;  %s37_s8 = sshll.u32 %s365_s4, 4  ;;  %s25_s28 = int_to_ptr.vmem [resolvable:$true] %s24_s28  ;;  %s38_s8 = int_to_ptr.hbm [resolvable:$true] %s37_s8 }
   0x4   :  { %27 = dma.hbm_to_vmem [thread:$0]  %s23_s26, 64, %s25_s28, [#allocation3]  }
   0x5   :  { %s289_s9 = smov [#allocation5]  }
   0x6   :  { %s39_s10 = sshll.u32 %s289_s9, 4  ;;  %s40_s10 = int_to_ptr.vmem [resolvable:$true] %s39_s10 }
   0x7   :  { %42 = dma.hbm_to_vmem [thread:$0]  %s38_s8, 16, %s40_s10, [#allocation6]  }
   0x8   :  { %282 = dma.done.wait [#allocation3], 64  }
   0x9   :  { %283 = vsyncadd [#allocation3], 4294967232 }
   0xa   :  { %284 = dma.done.wait [#allocation6], 16  }
   0xb   :  { %285 = vsyncadd [#allocation6], 4294967280  ;;  %vm67_vm0 = vcmask 1043456   ;;  %v58_v0 = vld [vmem:[#allocation2] sm:$0xf]  ;;  %vm63_vm1 = vcmask 64512  }
   0xc   :  { %v56_v1 = vld [vmem:[%s361_s0] sm:$0x3]  ;;  %v69_v2 = vsel %vm67_vm0, %v58_v0, 0  ;;  %v201_v4 = vld [vmem:[%s364_s3 + $0x8] sm:$0xff]  ;;  %vm106_vm2 = vcmask 261120   ;;  %s290_s20 = smov [#allocation7]  }
   0xd   :  { %v57_v3 = vpack.c.bf16 %v56_v1, %v56_v1  ;;  %78 = vmatpush.bf16.msra.mxu0 %v69_v2  ;;  %116 = vmatpush.bf16.msra.mxu1 %v201_v4  ;;  %v200_v5 = vld [vmem:[%s364_s3] sm:$0xff]  ;;  %v203_v12 = vld [vmem:[%s366_s5 + $0x8] sm:$0xff]  ;;  %s168_s21 = sshll.u32 %s290_s20, 4  ;;  %s170_s24 = sshll.u32 %s368_s7, 4  ;;  %vm161_vm3 = vcmask 25600   ;;  %s169_s21 = int_to_ptr.vmem [resolvable:$true] %s168_s21  ;;  %s171_s24 = int_to_ptr.hbm [resolvable:$true] %s170_s24 }
   0xe   :  { %v207_v6 = vld [vmem:[%s363_s2] ss:$0 sm:$0xff]  ;;  %154 = vmatpush.bf16.msra.mxu2 %v203_v12  ;;  %v208_v14 = vld [vmem:[#allocation5] ss:$0 sm:$0xff] }
   0xf   :  { %v202_v13 = vld [vmem:[%s366_s5] sm:$0xff] }
  0x10   :  { %181 = vmatmul.msk.bf16.vlgmr.msra.gmra.mxu0 %vm63_vm1, %v57_v3  ;;  %v209_v20 = vld [vmem:[%s367_s6] ss:$0 sm:$0xff] }
  0x11   :  { %117 = vmatpush.bf16.msra.mxu1 %v200_v5 }
  0x12   :  { %155 = vmatpush.bf16.msra.mxu2 %v202_v13 }
  0x8d   :  { %v80_v7 = vpop.f32.mrf.mxu0 }
  0x8e   :  { %v81_v8 = vadd.f32 %v207_v6, %v80_v7 }
  0x90   :  { %v84_v9 = vmax.f32 %v81_v8, 0.0 }
  0x92   :  { %v85_v10 = vpack.c.bf16 %v84_v9, %v84_v9 }
  0x94   :  { %190 = vmatmul.msk.bf16.vlgmr.msra.gmra.mxu1 %vm106_vm2, %v85_v10 }
  0x95   :  { %v82_v11 = vpop.f32.mrf.mxu0 }
 0x111   :  { %v119_v15 = vpop.f32.mrf.mxu1 }
 0x112   :  { %v120_v16 = vadd.f32 %v208_v14, %v119_v15 }
 0x114   :  { %v123_v17 = vmax.f32 %v120_v16, 0.0 }
 0x116   :  { %v124_v18 = vpack.c.bf16 %v123_v17, %v123_v17 }
 0x118   :  { %199 = vmatmul.msk.bf16.vlgmr.msra.gmra.mxu2 %vm106_vm2, %v124_v18 }
 0x119   :  { %v121_v19 = vpop.f32.mrf.mxu1 }
 0x19b   :  { %v157_v21 = vpop.f32.mrf.mxu2 }
 0x19c   :  { %v158_v22 = vadd.f32 %v209_v20, %v157_v21 }
 0x19e   :  { %162 = vst.msk [vmem:[#allocation7] sm:$0x3] %vm161_vm3, %v158_v22 }
 0x19f   :  { %173 = dma.vmem_to_hbm [thread:$0]  %s169_s21, 32, %s171_s24, [#allocation4]  }
 0x1a3   :  { %v159_v23 = vpop.f32.mrf.mxu2 }
 0x1a4   :  { %286 = dma.done.wait [#allocation4], 32  }
 0x1a5   :  { %287 = vsyncadd [#allocation4], 4294967264 }
 0x1a6   :  { %178 = vsyncpa [#allocation3], 1 }
 0x1a7   :  { %179 = vsyncpa [#allocation6], 1 }
 0x1a8   :  { %180 = vsyncpa [#allocation4], 1 }

</bundles_post_ra>
